<compile_context>
chip_gen: v6e
topology: v6e:2x2x1
jax: 0.10.0
libtpu: 0.0.40
codegen_flags: <defaults>
</compile_context>

<pallas_src>
import functools
import math

import jax
import jax.numpy as jnp
from jax import lax
from jax.experimental import pallas as pl
from jax.experimental.pallas import tpu as pltpu

BN_EPS = 1e-5
LANE = 128
TN = 256                       # output-channel tile (lane dense; >=2 tiles/layer for v7x megacore)
VMEM_LIMIT = 48 * 1024 * 1024  # <= v7x 64 MiB physical VMEM, with pipeline headroom


def _round_up(n, m):
    return ((n + m - 1) // m) * m


def _full_spec(shape):
    """BlockSpec covering the whole array (for grid=(1,) calls)."""
    n = len(shape)
    return pl.BlockSpec(shape, lambda *_args, _n=n: (0,) * _n)


# ---------------------------------------------------------------------------
# Kernel 1: one TDNN layer (context > 1).
#   input  : previous layer's post-ReLU activation h_prev (B, T, Cin) [bf16]
#            plus the previous layer's BN folded into (in_scale, in_shift).
#   output : this layer's post-ReLU, pre-BN activation (B, T_out, Cout) bf16 and
#            this layer's BN folded into (scale, shift) per channel.
#   grid   : (Cout // TN, B); channel tiles "parallel", batch "arbitrary" so the
#            per-column sum / sumsq accumulate in VMEM scratch across batches.
# ---------------------------------------------------------------------------
def _tdnn_kernel(x_ref, isc_ref, ish_ref, w_ref, b_ref, g_ref, be_ref,
                 h_ref, sc_ref, sh_ref, s_acc, ss_acc,
                 *, ctx, dil, t_out, inv_rows):
    bb = pl.program_id(1)

    # Previous layer's BatchNorm applied once per grid step (f32), then one bf16 cast.
    xb = (x_ref[0].astype(jnp.float32) * isc_ref[...] + ish_ref[...]
          ).astype(jnp.bfloat16)                                       # (T, Cin)

    # Unfold-free framed operand: lane-concat of the ctx shifted time slices, then a
    # single MXU dot with f32 accumulation (no per-context VPU adds).
    if ctx == 1:
        x_fr = xb
    else:
        x_fr = jnp.concatenate(
            [xb[i * dil:i * dil + t_out, :] for i in range(ctx)], axis=1)

    acc = jnp.dot(x_fr, w_ref[...], preferred_element_type=jnp.float32)
    h = jnp.maximum(acc + b_ref[...], 0.0)                             # Linear + ReLU (f32)
    h_ref[0] = h.astype(h_ref.dtype)                                   # store bf16

    # BatchNorm1d batch statistics over rows = batch*time, accumulated per column.
    @pl.when(bb == 0)
    def _():
        s_acc[...] = jnp.zeros_like(s_acc)
        ss_acc[...] = jnp.zeros_like(ss_acc)

    s_acc[...] += jnp.sum(h, axis=0, keepdims=True)
    ss_acc[...] += jnp.sum(h * h, axis=0, keepdims=True)

    @pl.when(bb == pl.num_programs(1) - 1)
    def _():
        mu = s_acc[...] * inv_rows
        var = jnp.maximum(ss_acc[...] * inv_rows - mu * mu, 0.0)
        scale = g_ref[...] * lax.rsqrt(var + BN_EPS)
        sc_ref[...] = scale
        sh_ref[...] = be_ref[...] - mu * scale


def tdnn_layer(x, in_scale, in_shift, w, b, gamma, beta, *, ctx, dil):
    B, T, cin = x.shape
    kc, cout = w.shape
    assert kc == ctx * cin
    t_out = T - (ctx - 1) * dil
    assert t_out > 0, "sequence too short for this TDNN context/dilation"
    tn = min(TN, cout)
    assert cout % tn == 0
    n_tiles = cout // tn

    kernel = functools.partial(_tdnn_kernel, ctx=ctx, dil=dil, t_out=t_out,
                               inv_rows=1.0 / float(B * t_out))

    return pl.pallas_call(
        kernel,
        out_shape=(jax.ShapeDtypeStruct((B, t_out, cout), jnp.bfloat16),
                   jax.ShapeDtypeStruct((1, cout), jnp.float32),
                   jax.ShapeDtypeStruct((1, cout), jnp.float32)),
        grid=(n_tiles, B),
        in_specs=[
            pl.BlockSpec((1, T, cin), lambda j, bb: (bb, 0, 0)),   # activation, per batch
            pl.BlockSpec((1, cin), lambda j, bb: (0, 0)),          # prev-layer BN scale
            pl.BlockSpec((1, cin), lambda j, bb: (0, 0)),          # prev-layer BN shift
            pl.BlockSpec((kc, tn), lambda j, bb: (0, j)),          # weight column tile (bf16)
            pl.BlockSpec((1, tn), lambda j, bb: (0, j)),           # bias tile
            pl.BlockSpec((1, tn), lambda j, bb: (0, j)),           # gamma tile
            pl.BlockSpec((1, tn), lambda j, bb: (0, j)),           # beta tile
        ],
        out_specs=(
            pl.BlockSpec((1, t_out, tn), lambda j, bb: (bb, 0, j)),
            pl.BlockSpec((1, tn), lambda j, bb: (0, j)),
            pl.BlockSpec((1, tn), lambda j, bb: (0, j)),
        ),
        scratch_shapes=[pltpu.VMEM((1, tn), jnp.float32),
                        pltpu.VMEM((1, tn), jnp.float32)],
        compiler_params=pltpu.CompilerParams(
            dimension_semantics=("parallel", "arbitrary"),
            vmem_limit_bytes=VMEM_LIMIT),
    )(x, in_scale, in_shift, w, b, gamma, beta)


# ---------------------------------------------------------------------------
# Kernel 2: last TDNN layer (ctx=1) fused with statistics pooling.
#   Emits per-(batch, channel) time-mean and time-E[h^2] of the post-ReLU, pre-BN
#   activation (so the (B, T, Cout) tensor never touches HBM) plus this layer's BN
#   as per-channel (scale, shift); the head applies the BN analytically.
# ---------------------------------------------------------------------------
def _tdnn_pool_kernel(x_ref, isc_ref, ish_ref, w_ref, b_ref, g_ref, be_ref,
                      mean_ref, msq_ref, sc_ref, sh_ref, s_acc, ss_acc,
                      *, inv_rows, inv_t):
    bb = pl.program_id(1)

    xb = (x_ref[0].astype(jnp.float32) * isc_ref[...] + ish_ref[...]
          ).astype(jnp.bfloat16)                                       # (T, Cin)
    h = jnp.maximum(jnp.dot(xb, w_ref[...], preferred_element_type=jnp.float32)
                    + b_ref[...], 0.0)                                 # (T, tn) f32

    col_sum = jnp.sum(h, axis=0, keepdims=True)                        # (1, tn)
    col_ssq = jnp.sum(h * h, axis=0, keepdims=True)

    # Per-batch time statistics (pre-BN) — pooled output written every step.
    mean_ref[0] = col_sum * inv_t
    msq_ref[0] = col_ssq * inv_t

    # BatchNorm1d batch statistics over rows = batch*time.
    @pl.when(bb == 0)
    def _():
        s_acc[...] = jnp.zeros_like(s_acc)
        ss_acc[...] = jnp.zeros_like(ss_acc)

    s_acc[...] += col_sum
    ss_acc[...] += col_ssq

    @pl.when(bb == pl.num_programs(1) - 1)
    def _():
        mu = s_acc[...] * inv_rows
        var = jnp.maximum(ss_acc[...] * inv_rows - mu * mu, 0.0)
        scale = g_ref[...] * lax.rsqrt(var + BN_EPS)
        sc_ref[...] = scale
        sh_ref[...] = be_ref[...] - mu * scale


def tdnn_pool_layer(x, in_scale, in_shift, w, b, gamma, beta):
    B, T, cin = x.shape
    kc, cout = w.shape
    assert kc == cin and T > 0
    tn = min(TN, cout)
    assert cout % tn == 0
    n_tiles = cout // tn

    kernel = functools.partial(_tdnn_pool_kernel,
                               inv_rows=1.0 / float(B * T), inv_t=1.0 / float(T))

    mean_h, msq_h, sc, sh = pl.pallas_call(
        kernel,
        out_shape=(jax.ShapeDtypeStruct((B, 1, cout), jnp.float32),
                   jax.ShapeDtypeStruct((B, 1, cout), jnp.float32),
                   jax.ShapeDtypeStruct((1, cout), jnp.float32),
                   jax.ShapeDtypeStruct((1, cout), jnp.float32)),
        grid=(n_tiles, B),
        in_specs=[
            pl.BlockSpec((1, T, cin), lambda j, bb: (bb, 0, 0)),
            pl.BlockSpec((1, cin), lambda j, bb: (0, 0)),
            pl.BlockSpec((1, cin), lambda j, bb: (0, 0)),
            pl.BlockSpec((kc, tn), lambda j, bb: (0, j)),
            pl.BlockSpec((1, tn), lambda j, bb: (0, j)),
            pl.BlockSpec((1, tn), lambda j, bb: (0, j)),
            pl.BlockSpec((1, tn), lambda j, bb: (0, j)),
        ],
        out_specs=(
            pl.BlockSpec((1, 1, tn), lambda j, bb: (bb, 0, j)),
            pl.BlockSpec((1, 1, tn), lambda j, bb: (bb, 0, j)),
            pl.BlockSpec((1, tn), lambda j, bb: (0, j)),
            pl.BlockSpec((1, tn), lambda j, bb: (0, j)),
        ),
        scratch_shapes=[pltpu.VMEM((1, tn), jnp.float32),
                        pltpu.VMEM((1, tn), jnp.float32)],
        compiler_params=pltpu.CompilerParams(
            dimension_semantics=("parallel", "arbitrary"),
            vmem_limit_bytes=VMEM_LIMIT),
    )(x, in_scale, in_shift, w, b, gamma, beta)
    return mean_h.reshape(B, cout), msq_h.reshape(B, cout), sc, sh


# ---------------------------------------------------------------------------
# Kernel 3: head — apply layer-4 BN analytically to the pooled stats, build
# pool = concat(mean, var), then fc1 (BN -> Linear -> BN -> ReLU), qw_mean,
# qw_var (Softplus), reparameterized sample. Tiny; one fused grid=(1,) call.
# Embed dim is padded to 128 so every store is lane dense.
# ---------------------------------------------------------------------------
def _head_kernel(mh_ref, mq_ref, sc4_ref, sh4_ref,
                 g1_ref, be1_ref, w1_ref, b1_ref, g2_ref, be2_ref,
                 wm_ref, bm_ref, wv_ref, bv_ref, eps_ref,
                 samp_ref, mean_ref, var_ref):
    sc = sc4_ref[...]                                              # (1, C) layer-4 BN scale
    sh = sh4_ref[...]                                              # (1, C) layer-4 BN shift
    mh = mh_ref[...]                                               # (B, C) time-mean of h (pre-BN)
    vh = jnp.maximum(mq_ref[...] - mh * mh, 0.0)                   # time-var of h (pre-BN)

    # Post-BN statistics: mean' = s*mean + sh, var' = s^2 * var.
    mean_y = mh * sc + sh
    var_y = vh * (sc * sc)
    pool = jnp.concatenate([mean_y, var_y], axis=-1)               # (B, 2C) f32

    # fc1: BatchNorm1d(2C) -> Linear -> BatchNorm1d(E) -> ReLU  (batch statistics)
    mu = jnp.mean(pool, axis=0, keepdims=True)
    v = jnp.maximum(jnp.mean(pool * pool, axis=0, keepdims=True) - mu * mu, 0.0)
    p = g1_ref[...] * (pool - mu) * lax.rsqrt(v + BN_EPS) + be1_ref[...]

    h = jnp.dot(p.astype(jnp.bfloat16), w1_ref[...],
                preferred_element_type=jnp.float32) + b1_ref[...]
    mu2 = jnp.mean(h, axis=0, keepdims=True)
    v2 = jnp.maximum(jnp.mean(h * h, axis=0, keepdims=True) - mu2 * mu2, 0.0)
    h = jnp.maximum(g2_ref[...] * (h - mu2) * lax.rsqrt(v2 + BN_EPS) + be2_ref[...], 0.0)
    hb = h.astype(jnp.bfloat16)

    mean = jnp.dot(hb, wm_ref[...], preferred_element_type=jnp.float32) + bm_ref[...]
    var = jax.nn.softplus(
        jnp.dot(hb, wv_ref[...], preferred_element_type=jnp.float32) + bv_ref[...])

    samp_ref[...] = mean + eps_ref[...] * jnp.sqrt(var)
    mean_ref[...] = mean
    var_ref[...] = var


def head(mean_h, msq_h, sc4, sh4, p, eps):
    B, C = mean_h.shape
    twoC = 2 * C
    E = p["w1"].shape[1]                                           # padded embed dim
    return pl.pallas_call(
        _head_kernel,
        out_shape=(jax.ShapeDtypeStruct((B, E), jnp.float32),
                   jax.ShapeDtypeStruct((B, E), jnp.float32),
                   jax.ShapeDtypeStruct((B, E), jnp.float32)),
        grid=(1,),
        in_specs=[_full_spec((B, C)), _full_spec((B, C)),
                  _full_spec((1, C)), _full_spec((1, C)),
                  _full_spec((1, twoC)), _full_spec((1, twoC)),
                  _full_spec((twoC, E)), _full_spec((1, E)),
                  _full_spec((1, E)), _full_spec((1, E)),
                  _full_spec((E, E)), _full_spec((1, E)),
                  _full_spec((E, E)), _full_spec((1, E)),
                  _full_spec((B, E))],
        out_specs=(_full_spec((B, E)), _full_spec((B, E)), _full_spec((B, E))),
        compiler_params=pltpu.CompilerParams(
            dimension_semantics=("arbitrary",),
            vmem_limit_bytes=VMEM_LIMIT),
    )(mean_h, msq_h, sc4, sh4, p["g1"], p["be1"], p["w1"], p["b1"],
      p["g2"], p["be2"], p["wm"], p["bm"], p["wv"], p["bv"], eps)


# ---------------------------------------------------------------------------
# Parameter init (PyTorch nn.Linear-style uniform). The 1500-channel last TDNN
# layer is padded to 1536 and the embed dim to 128 with ZERO weight/bias columns
# (padded channels stay exactly zero end-to-end, so the padded model equals the
# unpadded one; padded outputs are sliced off after the head call).
# ---------------------------------------------------------------------------
def init_linear(key, fan_in, fan_out, pad_out=None):
    kw, kb = jax.random.split(key)
    lim = 1.0 / math.sqrt(fan_in)
    w = jax.random.uniform(kw, (fan_in, fan_out), jnp.float32, -lim, lim)
    b = jax.random.uniform(kb, (1, fan_out), jnp.float32, -lim, lim)
    if pad_out is not None and pad_out > fan_out:
        w = jnp.pad(w, ((0, 0), (0, pad_out - fan_out)))
        b = jnp.pad(b, ((0, 0), (0, pad_out - fan_out)))
    return w, b


def init_params(key, D, embed_dim):
    keys = jax.random.split(key, 8)
    c_last = 1500
    c_last_pad = _round_up(c_last, LANE)                    # 1536 — lane-dense tiles
    e_pad = _round_up(embed_dim, LANE)                      # 128 — lane-dense head

    # (cin, cout_logical, cout_padded, context, dilation)
    tdnn_cfg = [(D, 512, 512, 5, 1), (512, 512, 512, 3, 2),
                (512, 512, 512, 3, 3), (512, c_last, c_last_pad, 1, 1)]
    tdnn = []
    for k, (cin, cout, cpad, ctx, dil) in zip(keys[:4], tdnn_cfg):
        w, b = init_linear(k, cin * ctx, cout, pad_out=cpad)
        tdnn.append((ctx, dil, w.astype(jnp.bfloat16), b,
                     jnp.ones((1, cpad), jnp.float32),      # BN gamma
                     jnp.zeros((1, cpad), jnp.float32)))    # BN beta

    # fc1: logical fan_in = 2*1500 = 3000; real weights scattered into the padded
    # pooled layout [mean(0:1500) | pad | var(0:1500) | pad]; padded rows/cols are 0.
    twoC_log = 2 * c_last
    twoC_pad = 2 * c_last_pad
    kw1, kb1 = jax.random.split(keys[4])
    lim1 = 1.0 / math.sqrt(twoC_log)
    w1_real = jax.random.uniform(kw1, (twoC_log, embed_dim), jnp.float32, -lim1, lim1)
    b1_real = jax.random.uniform(kb1, (1, embed_dim), jnp.float32, -lim1, lim1)
    w1 = jnp.zeros((twoC_pad, e_pad), jnp.float32)
    w1 = w1.at[:c_last, :embed_dim].set(w1_real[:c_last])
    w1 = w1.at[c_last_pad:c_last_pad + c_last, :embed_dim].set(w1_real[c_last:])
    b1 = jnp.zeros((1, e_pad), jnp.float32).at[:, :embed_dim].set(b1_real)

    def square_linear(k):
        kw, kb = jax.random.split(k)
        lim = 1.0 / math.sqrt(embed_dim)
        w = jax.random.uniform(kw, (embed_dim, embed_dim), jnp.float32, -lim, lim)
        b = jax.random.uniform(kb, (1, embed_dim), jnp.float32, -lim, lim)
        wp = jnp.zeros((e_pad, e_pad), jnp.float32).at[:embed_dim, :embed_dim].set(w)
        bp = jnp.zeros((1, e_pad), jnp.float32).at[:, :embed_dim].set(b)
        return wp, bp

    wm, bm = square_linear(keys[5])
    wv, bv = square_linear(keys[6])

    hp = dict(
        g1=jnp.ones((1, twoC_pad), jnp.float32), be1=jnp.zeros((1, twoC_pad), jnp.float32),
        w1=w1.astype(jnp.bfloat16), b1=b1,
        g2=jnp.ones((1, e_pad), jnp.float32), be2=jnp.zeros((1, e_pad), jnp.float32),
        wm=wm.astype(jnp.bfloat16), bm=bm,
        wv=wv.astype(jnp.bfloat16), bv=bv,
    )
    return dict(tdnn=tdnn, head=hp, e_pad=e_pad)


def qw_xvec_forward(params, x, eps):
    B, T, D = x.shape
    E = eps.shape[1]
    e_pad = params["e_pad"]

    # Cast the input once (layer-1's "previous BN" is the identity), so the first
    # layer's activation DMA runs at half width and all kernels see bf16 activations.
    h = x.astype(jnp.bfloat16)
    scale = jnp.ones((1, D), jnp.float32)
    shift = jnp.zeros((1, D), jnp.float32)

    for (ctx, dil, w, b, gamma, beta) in params["tdnn"][:-1]:
        h, scale, shift = tdnn_layer(h, scale, shift, w, b, gamma, beta, ctx=ctx, dil=dil)

    # Last (ctx=1) TDNN layer fused with statistics pooling.
    (_ctx, _dil, w4, b4, g4, be4) = params["tdnn"][-1]
    mean_h, msq_h, sc4, sh4 = tdnn_pool_layer(h, scale, shift, w4, b4, g4, be4)

    eps_pad = jnp.zeros((B, e_pad), jnp.float32).at[:, :E].set(eps)
    samp, mean, var = head(mean_h, msq_h, sc4, sh4, params["head"], eps_pad)
    return samp[:, :E], mean[:, :E], var[:, :E]


if __name__ == "__main__":
    B, T, D, EMBED = 2, 32, 16, 32
    key = jax.random.PRNGKey(0)
    kx, keps, kparam = jax.random.split(key, 3)

    x = jax.random.normal(kx, (B, T, D), jnp.float32)
    eps = jax.random.normal(keps, (B, EMBED), jnp.float32)   # torch.randn_like(mean)
    params = init_params(kparam, D, EMBED)

    samp, mean, var = qw_xvec_forward(params, x, eps)
    jax.block_until_ready((samp, mean, var))

    assert samp.shape == (B, EMBED) and mean.shape == (B, EMBED) and var.shape == (B, EMBED)
    assert bool(jnp.all(var > 0.0)) and bool(jnp.all(jnp.isfinite(samp)))
    print("KERNEL_OK")
</pallas_src>

<mosaic_0001>
module attributes {stable_mosaic.version = 11 : i64} {
  func.func @_tdnn_kernel(%arg0: i32, %arg1: i32, %arg2: memref<1x32x16xbf16, #tpu.memory_space<vmem>>, %arg3: memref<1x16xf32, #tpu.memory_space<vmem>>, %arg4: memref<1x16xf32, #tpu.memory_space<vmem>>, %arg5: memref<80x256xbf16, #tpu.memory_space<vmem>>, %arg6: memref<1x256xf32, #tpu.memory_space<vmem>>, %arg7: memref<1x256xf32, #tpu.memory_space<vmem>>, %arg8: memref<1x256xf32, #tpu.memory_space<vmem>>, %arg9: memref<1x28x256xbf16, #tpu.memory_space<vmem>>, %arg10: memref<1x256xf32, #tpu.memory_space<vmem>>, %arg11: memref<1x256xf32, #tpu.memory_space<vmem>>, %arg12: memref<1x256xf32, #tpu.memory_space<vmem>>, %arg13: memref<1x256xf32, #tpu.memory_space<vmem>>) attributes {dimension_semantics = [#tpu.dimension_semantics<parallel>, #tpu.dimension_semantics<arbitrary>], iteration_bounds = array<i64: 2, 2>, scalar_prefetch = 0 : i64, scratch_operands = 2 : i64, tpu.core_type = #tpu.core_type<tc>, window_params = [{transform_indices = @transform_0, window_bounds = array<i64: 1, 32, 16>}, {pipeline_mode = #tpu.pipeline_mode<synchronous>, transform_indices = @transform_1, window_bounds = array<i64: 1, 16>}, {pipeline_mode = #tpu.pipeline_mode<synchronous>, transform_indices = @transform_2, window_bounds = array<i64: 1, 16>}, {transform_indices = @transform_3, window_bounds = array<i64: 80, 256>}, {transform_indices = @transform_4, window_bounds = array<i64: 1, 256>}, {transform_indices = @transform_5, window_bounds = array<i64: 1, 256>}, {transform_indices = @transform_6, window_bounds = array<i64: 1, 256>}, {transform_indices = @transform_7, window_bounds = array<i64: 1, 28, 256>}, {transform_indices = @transform_8, window_bounds = array<i64: 1, 256>}, {transform_indices = @transform_9, window_bounds = array<i64: 1, 256>}]} {
    %c0 = arith.constant 0 : index
    %c0_0 = arith.constant 0 : index
    %c0_1 = arith.constant 0 : index
    %0 = vector.load %arg2[%c0, %c0_0, %c0_1] : memref<1x32x16xbf16, #tpu.memory_space<vmem>>, vector<1x32x16xbf16>
    %1 = vector.shape_cast %0 : vector<1x32x16xbf16> to vector<32x16xbf16>
    %2 = arith.extf %1 : vector<32x16xbf16> to vector<32x16xf32>
    %c0_2 = arith.constant 0 : index
    %c0_3 = arith.constant 0 : index
    %3 = vector.load %arg3[%c0_2, %c0_3] : memref<1x16xf32, #tpu.memory_space<vmem>>, vector<1x16xf32>
    %4 = vector.broadcast %3 : vector<1x16xf32> to vector<32x16xf32>
    %5 = arith.mulf %2, %4 : vector<32x16xf32>
    %c0_4 = arith.constant 0 : index
    %c0_5 = arith.constant 0 : index
    %6 = vector.load %arg4[%c0_4, %c0_5] : memref<1x16xf32, #tpu.memory_space<vmem>>, vector<1x16xf32>
    %7 = vector.broadcast %6 : vector<1x16xf32> to vector<32x16xf32>
    %8 = arith.addf %5, %7 : vector<32x16xf32>
    %9 = arith.truncf %8 : vector<32x16xf32> to vector<32x16xbf16>
    %10 = vector.extract_strided_slice %9 {offsets = [0, 0], sizes = [28, 16], strides = [1, 1]} : vector<32x16xbf16> to vector<28x16xbf16>
    %11 = vector.extract_strided_slice %9 {offsets = [1, 0], sizes = [28, 16], strides = [1, 1]} : vector<32x16xbf16> to vector<28x16xbf16>
    %12 = vector.extract_strided_slice %9 {offsets = [2, 0], sizes = [28, 16], strides = [1, 1]} : vector<32x16xbf16> to vector<28x16xbf16>
    %13 = vector.extract_strided_slice %9 {offsets = [3, 0], sizes = [28, 16], strides = [1, 1]} : vector<32x16xbf16> to vector<28x16xbf16>
    %14 = vector.extract_strided_slice %9 {offsets = [4, 0], sizes = [28, 16], strides = [1, 1]} : vector<32x16xbf16> to vector<28x16xbf16>
    %15 = tpu.concatenate %10, %11, %12, %13, %14 in 1 : vector<28x16xbf16>, vector<28x16xbf16>, vector<28x16xbf16>, vector<28x16xbf16>, vector<28x16xbf16> -> vector<28x80xbf16>
    %c0_6 = arith.constant 0 : index
    %c0_7 = arith.constant 0 : index
    %16 = vector.load %arg5[%c0_6, %c0_7] : memref<80x256xbf16, #tpu.memory_space<vmem>>, vector<80x256xbf16>
    %cst = arith.constant dense<0.000000e+00> : vector<28x256xf32>
    %17 = tpu.matmul %15, %16, %cst {dimension_numbers = #tpu.dot_dimension_numbers<[1], [0], [0], [1], [0, 0, 1, 1], [], []>} : vector<28x80xbf16>, vector<80x256xbf16>, vector<28x256xf32> -> vector<28x256xf32>
    %c0_8 = arith.constant 0 : index
    %c0_9 = arith.constant 0 : index
    %18 = vector.load %arg6[%c0_8, %c0_9] : memref<1x256xf32, #tpu.memory_space<vmem>>, vector<1x256xf32>
    %19 = vector.broadcast %18 : vector<1x256xf32> to vector<28x256xf32>
    %20 = arith.addf %17, %19 : vector<28x256xf32>
    %cst_10 = arith.constant 0.000000e+00 : f32
    %21 = vector.broadcast %cst_10 : f32 to vector<28x256xf32>
    %22 = arith.maximumf %20, %21 : vector<28x256xf32>
    %23 = arith.truncf %22 : vector<28x256xf32> to vector<28x256xbf16>
    %c0_11 = arith.constant 0 : index
    %c0_12 = arith.constant 0 : index
    %c0_13 = arith.constant 0 : index
    %24 = vector.load %arg9[%c0_11, %c0_12, %c0_13] : memref<1x28x256xbf16, #tpu.memory_space<vmem>>, vector<1x28x256xbf16>
    %25 = vector.shape_cast %24 : vector<1x28x256xbf16> to vector<28x256xbf16>
    %26 = vector.shape_cast %23 : vector<28x256xbf16> to vector<1x28x256xbf16>
    tpu.vector_store %arg9[%c0_11, %c0_12, %c0_13], %26 {strides = array<i32>} : memref<1x28x256xbf16, #tpu.memory_space<vmem>>, vector<1x28x256xbf16>,
    %c0_i32 = arith.constant 0 : i32
    %27 = arith.cmpi eq, %arg1, %c0_i32 : i32
    %28 = arith.extui %27 : i1 to i32
    %c0_i32_14 = arith.constant 0 : i32
    %29 = arith.cmpi ne, %28, %c0_i32_14 : i32
    scf.if %29 {
      %cst_26 = arith.constant 0.000000e+00 : f32
      %44 = vector.broadcast %cst_26 : f32 to vector<1x256xf32>
      %c0_27 = arith.constant 0 : index
      %c0_28 = arith.constant 0 : index
      %45 = vector.load %arg12[%c0_27, %c0_28] : memref<1x256xf32, #tpu.memory_space<vmem>>, vector<1x256xf32>
      tpu.vector_store %arg12[%c0_27, %c0_28], %44 {strides = array<i32>} : memref<1x256xf32, #tpu.memory_space<vmem>>, vector<1x256xf32>,
      %cst_29 = arith.constant 0.000000e+00 : f32
      %46 = vector.broadcast %cst_29 : f32 to vector<1x256xf32>
      %c0_30 = arith.constant 0 : index
      %c0_31 = arith.constant 0 : index
      %47 = vector.load %arg13[%c0_30, %c0_31] : memref<1x256xf32, #tpu.memory_space<vmem>>, vector<1x256xf32>
      tpu.vector_store %arg13[%c0_30, %c0_31], %46 {strides = array<i32>} : memref<1x256xf32, #tpu.memory_space<vmem>>, vector<1x256xf32>,
    } else {
    }
    %c0_15 = arith.constant 0 : index
    %c0_16 = arith.constant 0 : index
    %30 = vector.load %arg12[%c0_15, %c0_16] : memref<1x256xf32, #tpu.memory_space<vmem>>, vector<1x256xf32>
    %cst_17 = arith.constant dense<0.000000e+00> : vector<256xf32>
    %31 = vector.multi_reduction <add>, %22, %cst_17 [0] : vector<28x256xf32> to vector<256xf32>
    %32 = vector.shape_cast %31 : vector<256xf32> to vector<1x256xf32>
    %33 = arith.addf %30, %32 : vector<1x256xf32>
    %c0_18 = arith.constant 0 : index
    %c0_19 = arith.constant 0 : index
    %34 = vector.load %arg12[%c0_18, %c0_19] : memref<1x256xf32, #tpu.memory_space<vmem>>, vector<1x256xf32>
    tpu.vector_store %arg12[%c0_18, %c0_19], %33 {strides = array<i32>} : memref<1x256xf32, #tpu.memory_space<vmem>>, vector<1x256xf32>,
    %c0_20 = arith.constant 0 : index
    %c0_21 = arith.constant 0 : index
    %35 = vector.load %arg13[%c0_20, %c0_21] : memref<1x256xf32, #tpu.memory_space<vmem>>, vector<1x256xf32>
    %36 = arith.mulf %22, %22 : vector<28x256xf32>
    %cst_22 = arith.constant dense<0.000000e+00> : vector<256xf32>
    %37 = vector.multi_reduction <add>, %36, %cst_22 [0] : vector<28x256xf32> to vector<256xf32>
    %38 = vector.shape_cast %37 : vector<256xf32> to vector<1x256xf32>
    %39 = arith.addf %35, %38 : vector<1x256xf32>
    %c0_23 = arith.constant 0 : index
    %c0_24 = arith.constant 0 : index
    %40 = vector.load %arg13[%c0_23, %c0_24] : memref<1x256xf32, #tpu.memory_space<vmem>>, vector<1x256xf32>
    tpu.vector_store %arg13[%c0_23, %c0_24], %39 {strides = array<i32>} : memref<1x256xf32, #tpu.memory_space<vmem>>, vector<1x256xf32>,
    %c1_i32 = arith.constant 1 : i32
    %41 = arith.cmpi eq, %arg1, %c1_i32 : i32
    %42 = arith.extui %41 : i1 to i32
    %c0_i32_25 = arith.constant 0 : i32
    %43 = arith.cmpi ne, %42, %c0_i32_25 : i32
    scf.if %43 {
      %c0_26 = arith.constant 0 : index
      %c0_27 = arith.constant 0 : index
      %44 = vector.load %arg12[%c0_26, %c0_27] : memref<1x256xf32, #tpu.memory_space<vmem>>, vector<1x256xf32>
      %cst_28 = arith.constant 0.0178571437 : f32
      %45 = vector.broadcast %cst_28 : f32 to vector<1x256xf32>
      %46 = arith.mulf %44, %45 : vector<1x256xf32>
      %c0_29 = arith.constant 0 : index
      %c0_30 = arith.constant 0 : index
      %47 = vector.load %arg13[%c0_29, %c0_30] : memref<1x256xf32, #tpu.memory_space<vmem>>, vector<1x256xf32>
      %cst_31 = arith.constant 0.0178571437 : f32
      %48 = vector.broadcast %cst_31 : f32 to vector<1x256xf32>
      %49 = arith.mulf %47, %48 : vector<1x256xf32>
      %50 = arith.mulf %46, %46 : vector<1x256xf32>
      %51 = arith.subf %49, %50 : vector<1x256xf32>
      %cst_32 = arith.constant 0.000000e+00 : f32
      %52 = vector.broadcast %cst_32 : f32 to vector<1x256xf32>
      %53 = arith.maximumf %51, %52 : vector<1x256xf32>
      %c0_33 = arith.constant 0 : index
      %c0_34 = arith.constant 0 : index
      %54 = vector.load %arg7[%c0_33, %c0_34] : memref<1x256xf32, #tpu.memory_space<vmem>>, vector<1x256xf32>
      %cst_35 = arith.constant 9.99999974E-6 : f32
      %55 = vector.broadcast %cst_35 : f32 to vector<1x256xf32>
      %56 = arith.addf %53, %55 : vector<1x256xf32>
      %57 = math.rsqrt %56 : vector<1x256xf32>
      %58 = arith.mulf %54, %57 : vector<1x256xf32>
      %c0_36 = arith.constant 0 : index
      %c0_37 = arith.constant 0 : index
      %59 = vector.load %arg10[%c0_36, %c0_37] : memref<1x256xf32, #tpu.memory_space<vmem>>, vector<1x256xf32>
      tpu.vector_store %arg10[%c0_36, %c0_37], %58 {strides = array<i32>} : memref<1x256xf32, #tpu.memory_space<vmem>>, vector<1x256xf32>,
      %c0_38 = arith.constant 0 : index
      %c0_39 = arith.constant 0 : index
      %60 = vector.load %arg8[%c0_38, %c0_39] : memref<1x256xf32, #tpu.memory_space<vmem>>, vector<1x256xf32>
      %61 = arith.mulf %46, %58 : vector<1x256xf32>
      %62 = arith.subf %60, %61 : vector<1x256xf32>
      %c0_40 = arith.constant 0 : index
      %c0_41 = arith.constant 0 : index
      %63 = vector.load %arg11[%c0_40, %c0_41] : memref<1x256xf32, #tpu.memory_space<vmem>>, vector<1x256xf32>
      tpu.vector_store %arg11[%c0_40, %c0_41], %62 {strides = array<i32>} : memref<1x256xf32, #tpu.memory_space<vmem>>, vector<1x256xf32>,
    } else {
    }
    return
  }
  func.func @transform_0(%arg0: i32, %arg1: i32) -> (i32, i32, i32) {
    %c0_i32 = arith.constant 0 : i32
    %c0_i32_0 = arith.constant 0 : i32
    %c0_i32_1 = arith.constant 0 : i32
    return %arg1, %c0_i32, %c0_i32_0 : i32, i32, i32
  }
  func.func @transform_1(%arg0: i32, %arg1: i32) -> (i32, i32) {
    %c0_i32 = arith.constant 0 : i32
    %c0_i32_0 = arith.constant 0 : i32
    %c0_i32_1 = arith.constant 0 : i32
    return %c0_i32, %c0_i32_0 : i32, i32
  }
  func.func @transform_2(%arg0: i32, %arg1: i32) -> (i32, i32) {
    %c0_i32 = arith.constant 0 : i32
    %c0_i32_0 = arith.constant 0 : i32
    %c0_i32_1 = arith.constant 0 : i32
    return %c0_i32, %c0_i32_0 : i32, i32
  }
  func.func @transform_3(%arg0: i32, %arg1: i32) -> (i32, i32) {
    %c0_i32 = arith.constant 0 : i32
    %c0_i32_0 = arith.constant 0 : i32
    return %c0_i32, %arg0 : i32, i32
  }
  func.func @transform_4(%arg0: i32, %arg1: i32) -> (i32, i32) {
    %c0_i32 = arith.constant 0 : i32
    %c0_i32_0 = arith.constant 0 : i32
    return %c0_i32, %arg0 : i32, i32
  }
  func.func @transform_5(%arg0: i32, %arg1: i32) -> (i32, i32) {
    %c0_i32 = arith.constant 0 : i32
    %c0_i32_0 = arith.constant 0 : i32
    return %c0_i32, %arg0 : i32, i32
  }
  func.func @transform_6(%arg0: i32, %arg1: i32) -> (i32, i32) {
    %c0_i32 = arith.constant 0 : i32
    %c0_i32_0 = arith.constant 0 : i32
    return %c0_i32, %arg0 : i32, i32
  }
  func.func @transform_7(%arg0: i32, %arg1: i32) -> (i32, i32, i32) {
    %c0_i32 = arith.constant 0 : i32
    %c0_i32_0 = arith.constant 0 : i32
    return %arg1, %c0_i32, %arg0 : i32, i32, i32
  }
  func.func @transform_8(%arg0: i32, %arg1: i32) -> (i32, i32) {
    %c0_i32 = arith.constant 0 : i32
    %c0_i32_0 = arith.constant 0 : i32
    return %c0_i32, %arg0 : i32, i32
  }
  func.func @transform_9(%arg0: i32, %arg1: i32) -> (i32, i32) {
    %c0_i32 = arith.constant 0 : i32
    %c0_i32_0 = arith.constant 0 : i32
    return %c0_i32, %arg0 : i32, i32
  }
}

</mosaic_0001>

<bundles_post_ra>
// kernel: tpu_custom_call.1
= control target key start
LH: loop header
LB: loop body
LE: loop exit
PB: predicated region body
PF: predicated region fallthrough
CT: control target
= control target key end

     0   :  { %s1903_s0 = inlined_call_operand.vmem [shape: bf16[2,32,16], index: 0, kind: input, shape index: {}]   ;;  %s1904_s1 = inlined_call_operand.vmem [shape: f32[1,16], index: 1, kind: input, shape index: {}]   ;;  %s1905_s2 = inlined_call_operand.vmem [shape: f32[1,16], index: 2, kind: input, shape index: {}]   ;;  %s1906_s3 = inlined_call_operand.hbm [shape: bf16[80,512], index: 3, kind: input, shape index: {}]   ;;  %s1907_s4 = inlined_call_operand.vmem [shape: f32[1,512], index: 4, kind: input, shape index: {}]   ;;  %s1908_s5 = inlined_call_operand.vmem [shape: f32[1,512], index: 5, kind: input, shape index: {}]   ;;  %s1909_s6 = inlined_call_operand.vmem [shape: f32[1,512], index: 6, kind: input, shape index: {}]   ;;  %s1910_s7 = inlined_call_operand.vmem [shape: bf16[2,28,512], index: 7, kind: output, shape index: {0}]   ;;  %s1911_s8 = inlined_call_operand.hbm [shape: f32[1,512], index: 8, kind: output, shape index: {1}]   ;;  %s1912_s9 = inlined_call_operand.hbm [shape: f32[1,512], index: 9, kind: output, shape index: {2}]  }
   0x1   :  { %1922 = sst [smem:[#allocation23_spill]] %s1911_s8 }
   0x2   :  { %1923 = sst [smem:[#allocation24_spill]] %s1912_s9 }
   0x3   :  { %15 = vsyncpa [#allocation5], 0 }
   0x4   :  { %17 = vsyncpa [#allocation5 + $0x1], 0 }
   0x5   :  { %18 = vsyncpa [#allocation6], 0 }
   0x6   :  { %20 = vsyncpa [#allocation6 + $0x1], 0 }
   0x7   :  { %21 = vsyncpa [#allocation10], 0 }
   0x8   :  { %23 = vsyncpa [#allocation10 + $0x1], 0  ;;  %s1568_s30 = smov 0   ;;  %s1570_s10 = smov 0  }
   0x9   :  { %s1572_s11 = smov 0   ;;  %s1574_s12 = smov 0  }
   0xa   :  { %s1576_s13 = smov 0   ;;  %s1578_s14 = smov 0  }
   0xb   :  { %s1580_s15 = smov 0   ;;  %s1582_s16 = smov 0  }
   0xc   :  { %s1584_s17 = smov 0   ;;  %s1586_s18 = smov 0  }
   0xd LB: > { %1924 = sst [smem:[#allocation14_spill]] %s1471_s10  ;;  %s1131_s19 = sadd.s32 4294967295, %s1503_s18   ;;  %s1503_s18 = sphi %s1586_s18, %s29_s18   ;;  %s1499_s17 = sphi %s1584_s17, %s1951_s17   ;;  %s1495_s16 = sphi %s1582_s16, %s1950_s16   ;;  %s1491_s15 = sphi %s1580_s15, %s1949_s15   ;;  %s1487_s14 = sphi %s1578_s14, %s1948_s14   ;;  %s1483_s13 = sphi %s1576_s13, %s1947_s13   ;;  %s1479_s12 = sphi %s1574_s12, %s1953_s12   ;;  %s1475_s11 = sphi %s1572_s11, %s1952_s11   ;;  %s1471_s10 = sphi %s1570_s10, %s1945_s10   ;;  %s1467_s30 = sphi %s1568_s30, %s1944_s30  }
   0xe   : > { %1925 = sst [smem:[#allocation15_spill]] %s1483_s13  ;;  %s1132_s20 = sadd.s32 4294967294, %s1503_s18  }
   0xf   : > { %1926 = sst [smem:[#allocation16_spill]] %s1495_s16  ;;  %s38_s21 = sadd.s32 1, %s1495_s16 }
  0x10   : > { %1927 = sst [smem:[#allocation17_spill]] %s1499_s17  ;;  %s41_s22 = sadd.s32 1, %s1499_s17 }
  0x11   : > { %p39_p0 = scmp.ge.s32.totalorder %s38_s21, 2  ;;  %s116_s23 = sadd.s32 1, %s1483_s13 }
  0x12   : > { %p123_p1 = scmp.ne.s32.totalorder %s1483_s13, %s1479_s12  ;;  %p124_p2 = scmp.eq.s32.totalorder %s1503_s18, 0 }
  0x13   : > { %s1955_s21 = smov (%p39_p0, %s38_s21), 0  ;;  %s1957_s22 = smov (!%p39_p0, %s41_s22), %s1499_s17 }
  0x14   : > { %1928 = sst [smem:[#allocation18_spill]] %s1955_s21  ;;  %p1632_p3 = por %p124_p2, %p123_p1 }
  0x15   : > { %p129_p4 = scmp.ne.s32.totalorder %s1479_s12, %s1475_s11  ;;  %p43_p5 = scmp.ge.s32.totalorder %s1957_s22, 2 }
  0x16   : > { %p130_p6 = scmp.eq.s32.totalorder %s1131_s19, 0  ;;  %s217_s25 = ssub.s32 %s1495_s16, %s1955_s21 }
  0x17   : > { %s222_s26 = sadd.s32 1, %s1471_s10  ;;  %s1959_s22 = smov (%p43_p5, %s1957_s22), 0 }
  0x18   : > { %1930 = sst [smem:[#allocation19_spill]] %s1959_s22  ;;  %p1646_p7 = por %p130_p6, %p129_p4 }
  0x19   : > { %p232_p8 = scmp.ne.s32.totalorder %s1471_s10, %s1467_s30  ;;  %s113_s28 = ssub.s32 %s1499_s17, %s1959_s22 }
  0x1a   : > { %p233_p9 = scmp.eq.s32.totalorder %s1131_s19, 3  ;;  %p114_p10 = scmp.eq.s32.totalorder %s113_s28, 0 }
  0x1b   : > { %s219_s29 = sor.u32 %s217_s25, %s113_s28  ;;  %p265_p0 = scmp.eq.s32.totalorder %s1132_s20, 3 }
  0x1c   : > { %p220_p11 = scmp.eq.s32.totalorder %s219_s29, 0  ;;  %p1654_p12 = por %p233_p9, %p232_p8 }
  0x1d   : > { %s1659_s16 = scalar_select %p114_p10, %s1483_s13, %s116_s23  }
  0x1e   : > { %s1662_s9 = scalar_select %p220_p11, %s1471_s10, %s222_s26  }
  0x1f   : > { %1933 = sst [smem:[#allocation20_spill]] %s1659_s16  ;;  %p1667_p13 = por %p233_p9, %p123_p1 }
  0x20   : > { %1934 = sst [smem:[#allocation21_spill]] %s1662_s9  ;;  %p1224_p2 = scmp.lt.s32.totalorder %s1503_s18, 4 }
  0x21   : > { %p1675_p5 = por %p265_p0, %p129_p4  ;;  %s325_s25 = sand.u32 1, %s1483_s13  }
  0x22   : > { %s1205_s28 = smul.u32 80, %s325_s25  ;;  %s1178_s29 = sshll.u32 %s1499_s17, 7 }
  0x23   : > { %s1936_s19 = scalar_select %p1675_p5, 1, 0 }
  0x24   : > { %p1683_p6 = pnand %p1224_p2, %p1632_p3  ;;  %s335_s16 = scalar_lea.hbm %s1906_s3, %s1178_s29 }
  0x25   : > { %1937 = sst [smem:[#allocation22_spill]] %s1936_s19  ;;  %s329_s20 = scalar_lea.vmem [#allocation4], %s1205_s28 }
  0x26   : > { %s336_s9 = sshll.u32 %s329_s20, 4  ;;  %s326_s10 = scalar_lea.sflag [#allocation5], %s325_s25  ;;  %s337_s9 = int_to_ptr.vmem [resolvable:$true] %s336_s9 }
  0x27   : > { %p1335_p1 = pneg %p1683_p6  ;;  %s1346_s19 = scalar_lea.vmem %s337_s9, 1280 }
  0x28   : > { %p1347_p4 = scmp.ne.s32.totalorder %s337_s9, %s1346_s19  ;;  %s1505_s24 = smov [#allocation4]  }
  0x29   : > { %s1351_s17 = sshll.u32 %s1505_s24, 4  ;;  %s1352_s17 = int_to_ptr.vmem [resolvable:$false] %s1351_s17 }
  0x2a   : > { %p1349_p8 = pnand %p1347_p4, %p1335_p1  ;;  %s1353_s13 = scalar_lea.vmem %s1352_s17, 2560 }
  0x2b   : > { %p1354_p3 = scmp.lt.s32.totalorder %s337_s9, %s1352_s17  ;;  %p1355_p10 = scmp.lt.s32.totalorder %s1353_s13, %s1346_s19 }
  0x2c   : > { %p1350_p9 = pneg %p1349_p8 }
  0x2d   : > { %p1356_p11 = por %p1355_p10, %p1354_p3 }
  0x2f   : > { %p1357_p0 = pnand %p1356_p11, %p1350_p9 }
  0x31   : > { %1360 = shalt.err (!%p1357_p0)
}
  0x32   : > { %s1506_s22 = smov 256   ;;  %s1507_s25 = smov 128  }
  0x33   : > { %s1508_s28 = smov 8   ;;  %p1137_p2 = scmp.ge.s32.totalorder %s1503_s18, 1 }
  0x34   : > { %1216 = dma.hbm_to_vmem [thread:$0]  (!%p1683_p6), %s335_s16, 1280, %s337_s9, %s326_s10, %s1506_s22, %s1507_s25, %s1508_s28  }
  0x35   : > { %p368_p1 = scmp.lt.s32.totalorder %s1503_s18, 5 }
  0x37   : > { %p369_p4 = pnand %p1137_p2, %p368_p1 }
  0x38   : > { %s1697_s29 = sand.u32 (!%p369_p4), 1, %s1479_s12  }
  0x39   : > { %372 = sbr.rel (%p369_p4) target bundleno = 540 (0x21c), region = 48  ;;  %s375_s17 = scalar_lea.sflag (!%p369_p4), [#allocation5], %s1697_s29 }
  0x3a   : > { %s1206_s13 = smul.u32 (!%p369_p4), 80, %s1697_s29 }
  0x3c   : > { %s1701_s19 = scalar_lea.vmem (!%p369_p4), [#allocation4], %s1206_s13 }
  0x3e   : > { %1454 = dma.done.wait (%p1646_p7), %s375_s17, 1280  }
  0x3f   : > { %1456 = vsyncadd (%p1646_p7), %s375_s17, 4294966016  ;;  %p439_p6 = scmp.lt.s32.totalorder %s1487_s14, 1  ;;  %s1139_s10 = sshll.u32 %s1697_s29, 1  ;;  %v1146_v1 = vld [vmem:[%s1904_s1] ss:$0 sm:$0xff]  ;;  %vm518_vm0 = vcmask 1046528  }
  0x40   : > { %v1147_v2 = vld [vmem:[%s1905_s2] ss:$0 sm:$0xff]  ;;  %v1318_v9 = vld [vmem:[%s1701_s19 + $0x40] ss:$8 sps:$4 sm:$0xff]   ;;  %v1321_v17 = vld [vmem:[%s1701_s19 + $0x30] ss:$8 sps:$4 sm:$0xff]  }
  0x41   : > { %s440_s9 = scalar_select %p439_p6, %s1487_s14, 1  ;;  %v1316_v8 = vld [vmem:[%s1701_s19 + $0x44] ss:$8 sps:$4 sm:$0xff]   ;;  %v1319_v12 = vld [vmem:[%s1701_s19 + $0x34] ss:$8 sps:$4 sm:$0xff]   ;;  %v1510_v38 = vmov 0  }
  0x42   : > { %1195 = vmatprep.subr.bf16.mxu1 %v1316_v8  ;;  %649 = vmatprep.subr.bf16.mxu0 %v1316_v8  ;;  %v1322_v20 = vld [vmem:[%s1701_s19 + $0x24] ss:$8 sps:$4 sm:$0xff]   ;;  %v1324_v26 = vld [vmem:[%s1701_s19 + $0x20] ss:$8 sps:$4 sm:$0xff]   ;;  %v1325_v30 = vld [vmem:[%s1701_s19 + $0x14] ss:$8 sps:$4 sm:$0xff]  }
  0x43   : > { %s1179_s16 = sshll.u32 %s440_s9, 4  ;;  %1200 = vmatpush1.bf16.msra.mxu1 %v1318_v9  ;;  %650 = vmatpush1.bf16.msra.mxu0 %v1318_v9  ;;  %s1509_s28 = smov 32   ;;  %vm496_vm1 = vsmask.f32 7424  ;;  %v1327_v40 = vld [vmem:[%s1701_s19 + $0x10] ss:$8 sps:$4 sm:$0xff]  }
  0x44   : > { %s443_s20 = scalar_lea.vmem %s1903_s0, %s1179_s16  ;;  %1196 = vmatprep.subr.bf16.mxu1 %v1319_v12  ;;  %651 = vmatprep.subr.bf16.mxu0 %v1319_v12  ;;  %v1328_v42 = vld [vmem:[%s1701_s19 + $0x4] ss:$8 sps:$4 sm:$0xff]   ;;  %s1511_s13 = smov 16   ;;  %vm526_vm2 = vsmask.f32 6400  ;;  %vm538_vm3 = vcmask 1045504  }
  0x45   : > { %v1194_v0 = vld [vmem:[%s443_s20 + $0x8] sm:$0xff]   ;;  %v1187_v5 = vld [vmem:[%s443_s20] sm:$0xff]   ;;  %685 = vmatprep.mubr.bf16.mxu1 %v1510_v38  ;;  %675 = vmatprep.mubr.bf16.mxu0 %v1510_v38  ;;  %s1739_s17 = sshll.u32 %s1491_s15, 1  ;;  %s1512_s16 = smov 48   ;;  %vm546_vm4 = vcmask 130048   ;;  %vm551_vm5 = vcmask 261120  }
  0x46   : > { %v1192_v3 = vunpack.c.l.bf16 %v1194_v0  ;;  %v1193_v4 = vunpack.c.h.bf16 %v1194_v0  ;;  %v1188_v6 = vunpack.c.l.bf16 %v1187_v5  ;;  %v1189_v7 = vunpack.c.h.bf16 %v1187_v5  ;;  %p446_p7 = scmp.lt.s32.totalorder %s1739_s17, 3  ;;  %v1330_v46 = vld [vmem:[%s1701_s19] ss:$8 sps:$4 sm:$0xff]   ;;  %s1513_s27 = smov 64  }
  0x47   : > { %1201 = vmatpush1.bf16.msra.mxu1 %v1321_v17  ;;  %652 = vmatpush1.bf16.msra.mxu0 %v1321_v17  ;;  %vm556_vm6 = vcmask 392192   ;;  %vm561_vm7 = vcmask 523264   ;;  %vm638_vm8 = vcmask 654336   ;;  %s1780_s19 = scalar_lea.vmem [#allocation9], %s1139_s10  ;;  %p1164_p8 = scmp.ne.s32.totalorder %s1487_s14, 0 }
  0x48   : > { %v481_v10 = vmul.f32 %v1192_v3, %v1146_v1  ;;  %v482_v11 = vmul.f32 %v1193_v4, %v1146_v1  ;;  %v479_v13 = vmul.f32 %v1188_v6, %v1146_v1  ;;  %v480_v14 = vmul.f32 %v1189_v7, %v1146_v1  ;;  %1197 = vmatprep.subr.bf16.mxu1 %v1322_v20  ;;  %s1744_s9 = scalar_select %p446_p7, %s1739_s17, 3 }
  0x49   : > { %653 = vmatprep.subr.bf16.mxu0 %v1322_v20  ;;  %v578_v3 = vlaneseq }
  0x4a   : > { %v492_v15 = vadd.f32 %v1147_v2, %v481_v10  ;;  %v493_v16 = vadd.f32 %v1147_v2, %v482_v11  ;;  %v490_v18 = vadd.f32 %v1147_v2, %v479_v13  ;;  %v491_v19 = vadd.f32 %v1147_v2, %v480_v14  ;;  %s453_s20 = scalar_lea.vmem %s1908_s5, %s1744_s9  ;;  %s458_s22 = scalar_lea.vmem %s1909_s6, %s1744_s9 }
  0x4b   : > { %1202 = vmatpush1.bf16.msra.mxu1 %v1324_v26  ;;  %654 = vmatpush1.bf16.msra.mxu0 %v1324_v26  ;;  %v1759_v4 = vshrl.u32 %v578_v3, 7 }
  0x4c   : > { %v1724_v21 = vpack.c.bf16 %v493_v16, %v492_v15  ;;  %v1726_v22 = vpack.c.bf16 %v491_v19, %v490_v18  ;;  %1198 = vmatprep.subr.bf16.mxu1 %v1325_v30  ;;  %655 = vmatprep.subr.bf16.mxu0 %v1325_v30 }
  0x4d   : > { %v580_v5 = vsub.s32 0, %v1759_v4  ;;  %v584_v7 = vsub.s32 1, %v1759_v4 }
  0x4e   : > { %v520_v23 = vrot.slane %v1724_v21, 1  ;;  %v505_v24 = vshll.u32 %v1724_v21, 16  ;;  %v509_v25 = vshrl.u32 %v1724_v21, 16  ;;  %v519_v27 = vrot.slane %v1726_v22, 1 }
  0x4f   : > { %v498_v28 = vshrl.u32 %v1726_v22, 16  ;;  %v500_v29 = vshll.u32 %v1726_v22, 16  ;;  %1203 = vmatpush1.bf16.msra.mxu1 %v1327_v40  ;;  %656 = vmatpush1.bf16.msra.mxu0 %v1327_v40  ;;  %v540_v47 = vrot.slane %v1724_v21, 2  ;;  %v539_v49 = vrot.slane %v1726_v22, 2 }
  0x50   : > { %524 = vrot.lane.b32.xlu1 %v520_v23, %s1509_s28  ;;  %v507_v31 = vrot.slane %v505_v24, 1  ;;  %v530_v32 = vrot.slane %v509_v25, 1  ;;  %v531_v33 = vrot.slane %v505_v24, 2  ;;  %v521_v34 = vsel %vm518_vm0, %v519_v27, %v520_v23  ;;  %1199 = vmatprep.subr.bf16.mxu1 %v1328_v42 }
  0x51   : > { %v502_v35 = vrot.slane %v500_v29, 1  ;;  %v527_v36 = vrot.slane %v498_v28, 1  ;;  %v528_v37 = vrot.slane %v500_v29, 2  ;;  %657 = vmatprep.subr.bf16.mxu0 %v1328_v42  ;;  %v541_v50 = vsel %vm538_vm3, %v539_v49, %v540_v47 }
  0x52   : > { %v511_v39 = vor.u32 %v509_v25, %v507_v31  ;;  %v532_v43 = vor.u32 %v531_v33, %v530_v32 }
  0x53   : > { %v503_v41 = vor.u32 %v502_v35, %v498_v28  ;;  %v529_v45 = vor.u32 %v528_v37, %v527_v36  ;;  %1204 = vmatpush1.bf16.msra.mxu1 %v1330_v46  ;;  %658 = vmatpush1.bf16.msra.mxu0 %v1330_v46 }
  0x54   : > { %514 = vrot.lane.b32.xlu0 %v511_v39, %s1511_s13  ;;  %522 = vrot.lane.b32.xlu1 %v521_v34, %s1509_s28 }
  0x55   : > { %v508_v44 = vsel %vm496_vm1, %v503_v41, %v507_v31  ;;  %v533_v48 = vsel %vm526_vm2, %v529_v45, %v532_v43 }
  0x58   : > { %536 = vrot.lane.b32.xlu1 %v532_v43, %s1512_s16  ;;  %512 = vrot.lane.b32.xlu0 %v508_v44, %s1511_s13  ;;  %s448_s13 = scalar_lea.vmem %s1907_s4, %s1744_s9 }
  0x59   : > { %v576_v6 = vld [vmem:[%s448_s13] sm:$0x3] }
  0x5a   : > { %v581_v8 = vrot.slane %v576_v6, %v580_v5  ;;  %v585_v9 = vrot.slane %v576_v6, %v584_v7 }
  0x5c   : > { %544 = vrot.lane.b32.xlu1 %v540_v47, %s1513_s27  ;;  %534 = vrot.lane.b32.xlu0 %v533_v48, %s1512_s16  ;;  %s422_s16 = sand.u32 1, %s1467_s30   ;;  %s1776_s30 = scalar_lea.vmem [#allocation8], %s1139_s10 }
  0x5d   : > { %s1138_s23 = sshll.u32 %s422_s16, 5 }
  0x5e   : > { %s1768_s26 = scalar_lea.vmem [#allocation7], %s1138_s23 }
  0x60   : > { %542 = vrot.lane.b32.xlu0 %v541_v50, %s1513_s27 }
  0xc2   : > { %v525_v51 = vpop.permute.xlu1 %524 }
  0xc6   : > { %v515_v52 = vpop.permute.xlu0 %514  ;;  %v523_v53 = vpop.permute.xlu1 %522 }
  0xc7   : > { %v550_v54 = vsel %vm546_vm4, %v1724_v21, %v515_v52 }
  0xc8   : > { %v555_v57 = vsel %vm551_vm5, %v550_v54, %v525_v51 }
  0xca   : > { %v537_v55 = vpop.permute.xlu1 %536  ;;  %v513_v56 = vpop.permute.xlu0 %512 }
  0xcb   : > { %v560_v58 = vsel %vm556_vm6, %v555_v57, %v537_v55  ;;  %v548_v59 = vsel %vm546_vm4, %v1726_v22, %v513_v56 }
  0xcc   : > { %v553_v63 = vsel %vm551_vm5, %v548_v59, %v523_v53 }
  0xce   : > { %v545_v60 = vpop.permute.xlu1 %544  ;;  %v535_v61 = vpop.permute.xlu0 %534 }
  0xcf   : > { %v565_v62 = vsel %vm561_vm7, %v560_v58, %v545_v60  ;;  %v558_v0 = vsel %vm556_vm6, %v553_v63, %v535_v61 }
  0xd0   : > { %1159 = vmatmul.mubr.msk.bf16.vlgmr.msra.gmra.mxu1 %vm638_vm8, %v565_v62 }
  0xd2   : > { %v543_v1 = vpop.permute.xlu0 %542 }
  0xd3   : > { %v563_v2 = vsel %vm561_vm7, %v558_v0, %v543_v1 }
  0xd4   : > { %1158 = vmatmul.mubr.msk.bf16.vlgmr.msra.gmra.mxu0 %vm638_vm8, %v563_v2 }
 0x190   : > { %v687_v10 = vpop.f32.mrf.mxu1 }
 0x191   : > { %v688_v11 = vadd.f32 %v687_v10, %v581_v8 }
 0x192   : > { %v689_v12 = vpop.f32.mrf.mxu1 }
 0x193   : > { %v690_v13 = vadd.f32 %v689_v12, %v585_v9  ;;  %v700_v16 = vmax.f32 %v688_v11, 0.0 }
 0x194   : > { %v677_v14 = vpop.f32.mrf.mxu0  ;;  %v691_v15 = vpop.f32.mrf.mxu1 }
 0x195   : > { %v701_v17 = vmax.f32 %v690_v13, 0.0  ;;  %v678_v18 = vadd.f32 %v677_v14, %v581_v8  ;;  %v692_v19 = vadd.f32 %v691_v15, %v581_v8 }
 0x196   : > { %v679_v20 = vpop.f32.mrf.mxu0  ;;  %v693_v21 = vpop.f32.mrf.mxu1 }
 0x197   : > { %v1182_v22 = vpack.c.bf16 %v701_v17, %v700_v16  ;;  %v680_v23 = vadd.f32 %v679_v20, %v585_v9  ;;  %v694_v24 = vadd.f32 %v693_v21, %v585_v9  ;;  %v696_v26 = vmax.f32 %v678_v18, 0.0 }
 0x198   : > { %v681_v25 = vpop.f32.mrf.mxu0  ;;  %v702_v29 = vmax.f32 %v692_v19, 0.0 }
 0x199   : > { %730 = vst [vmem:[%s1768_s26 + $0x10] sm:$0xff] %v1182_v22  ;;  %v697_v27 = vmax.f32 %v680_v23, 0.0  ;;  %v682_v28 = vadd.f32 %v681_v25, %v581_v8  ;;  %v703_v30 = vmax.f32 %v694_v24, 0.0 }
 0x19a   : > { %v683_v31 = vpop.f32.mrf.mxu0 }
 0x19b   : > { %v1180_v32 = vpack.c.bf16 %v697_v27, %v696_v26  ;;  %v684_v33 = vadd.f32 %v683_v31, %v585_v9  ;;  %v1183_v34 = vpack.c.bf16 %v703_v30, %v702_v29  ;;  %v698_v35 = vmax.f32 %v682_v28, 0.0 }
 0x19d   : > { %728 = vst [vmem:[%s1768_s26] sm:$0xff] %v1180_v32  ;;  %v699_v36 = vmax.f32 %v684_v33, 0.0  ;;  %731 = vst [vmem:[%s1768_s26 + $0x18] sm:$0x33] %v1183_v34  ;;  %735 = sbr.rel (%p1164_p8) target bundleno = 420 (0x1a4), region = 56 }
 0x19f   : > { %v1181_v37 = vpack.c.bf16 %v699_v36, %v698_v35 }
 0x1a1   : > { %729 = vst [vmem:[%s1768_s26 + $0x8] sm:$0xff] %v1181_v37 }
 0x1a2   : > { %vm738_vm9 = vcmp.lt.s32.totalorder %v578_v3, 256  ;;  %v1514_v38 = vmov 0.0  }
 0x1a3   : > { %740 = vst.msk [vmem:[#allocation2] sm:$0x3] %vm738_vm9, %v1514_v38  ;;  %741 = vst.msk [vmem:[#allocation3] sm:$0x3] %vm738_vm9, %v1514_v38 }
 0x1a4 PF: > { %v743_v39 = vadd.f32 %v698_v35, %v696_v26  ;;  %vm745_vm10 = vcmask 1043456   ;;  %v754_v40 = vadd.f32 %v699_v36, %v697_v27  ;;  %v789_v45 = vmul.f32 %v696_v26, %v696_v26  ;;  %p1165_p9 = scmp.ne.s32.totalorder %s1487_s14, 1 }
 0x1a5   : > { %v746_v41 = vsel %vm745_vm10, %v702_v29, 0.0  ;;  %v756_v42 = vsel %vm745_vm10, %v703_v30, 0.0  ;;  %v790_v46 = vmul.f32 %v697_v27, %v697_v27  ;;  %v791_v47 = vmul.f32 %v698_v35, %v698_v35 }
 0x1a6   : > { %v744_v43 = vadd.f32 %v743_v39, %v700_v16  ;;  %v755_v44 = vadd.f32 %v754_v40, %v701_v17  ;;  %v792_v48 = vmul.f32 %v699_v36, %v699_v36  ;;  %v793_v49 = vmul.f32 %v700_v16, %v700_v16 }
 0x1a7   : > { %v794_v52 = vmul.f32 %v701_v17, %v701_v17  ;;  %v795_v53 = vmul.f32 %v702_v29, %v702_v29  ;;  %v796_v54 = vmul.f32 %v703_v30, %v703_v30  ;;  %v797_v55 = vadd.f32 %v791_v47, %v789_v45 }
 0x1a8   : > { %v747_v50 = vadd.f32 %v746_v41, %v744_v43  ;;  %v757_v51 = vadd.f32 %v756_v42, %v755_v44  ;;  %v807_v56 = vadd.f32 %v792_v48, %v790_v46  ;;  %v1515_v1 = vmov 1966171168  }
 0x1a9   : > { %v799_v59 = vsel %vm745_vm10, %v795_v53, 0.0  ;;  %v798_v60 = vadd.f32 %v797_v55, %v793_v49  ;;  %v809_v62 = vsel %vm745_vm10, %v796_v54, 0.0  ;;  %v768_v2 = vunpack.c.l.s4 %v1515_v1 }
 0x1aa   : > { %v748_v57 = vrot.slane %v747_v50, 4  ;;  %v758_v58 = vrot.slane %v757_v51, 4  ;;  %v808_v61 = vadd.f32 %v807_v56, %v794_v52  ;;  %v742_v29 = vld [vmem:[#allocation2] sm:$0x3]  ;;  %vm1790_vm11 = vcmp.lt.s32.totalorder %v578_v3, 256 }
 0x1ab   : > { %v800_v5 = vadd.f32 %v799_v59, %v798_v60  ;;  %v769_v13 = vunpack.c.0.s8 %v768_v2 }
 0x1ac   : > { %v749_v63 = vadd.f32 %v748_v57, %v747_v50  ;;  %v759_v0 = vadd.f32 %v758_v58, %v757_v51  ;;  %v810_v6 = vadd.f32 %v809_v62, %v808_v61 }
 0x1ad   : > { %v801_v9 = vrot.slane %v800_v5, 4  ;;  %v772_v22 = vsub.s32 %v769_v13, %v1759_v4  ;;  %v788_v4 = vld [vmem:[#allocation3] sm:$0x3] }
 0x1ae   : > { %v750_v7 = vrot.slane %v749_v63, 2  ;;  %v760_v8 = vrot.slane %v759_v0, 2  ;;  %v811_v10 = vrot.slane %v810_v6, 4 }
 0x1af   : > { %v802_v14 = vadd.f32 %v801_v9, %v800_v5 }
 0x1b0   : > { %v751_v11 = vadd.f32 %v750_v7, %v749_v63  ;;  %v761_v12 = vadd.f32 %v760_v8, %v759_v0  ;;  %v812_v15 = vadd.f32 %v811_v10, %v810_v6 }
 0x1b1   : > { %v803_v18 = vrot.slane %v802_v14, 2 }
 0x1b2   : > { %v752_v16 = vrot.slane %v751_v11, 1  ;;  %v762_v17 = vrot.slane %v761_v12, 1  ;;  %v813_v19 = vrot.slane %v812_v15, 2 }
 0x1b3   : > { %v804_v23 = vadd.f32 %v803_v18, %v802_v14 }
 0x1b4   : > { %v753_v20 = vadd.f32 %v752_v16, %v751_v11  ;;  %v763_v21 = vadd.f32 %v762_v17, %v761_v12  ;;  %v814_v24 = vadd.f32 %v813_v19, %v812_v15 }
 0x1b5   : > { %v805_v26 = vrot.slane %v804_v23, 1 }
 0x1b6   : > { %v766_v25 = vcombine.low %v753_v20, %v763_v21  ;;  %v815_v27 = vrot.slane %v814_v24, 1 }
 0x1b7   : > { %v806_v30 = vadd.f32 %v805_v26, %v804_v23 }
 0x1b8   : > { %v773_v28 = vrot.slane %v766_v25, %v772_v22  ;;  %v816_v31 = vadd.f32 %v815_v27, %v814_v24 }
 0x1ba   : > { %v780_v32 = vrot.slane %v773_v28, %v772_v22  ;;  %v819_v34 = vcombine.low %v806_v30, %v816_v31 }
 0x1bc   : > { %v782_v35 = vadd.f32 %v780_v32, %v742_v29  ;;  %v826_v36 = vrot.slane %v819_v34, %v772_v22 }
 0x1be   : > { %787 = vst.msk [vmem:[#allocation2] sm:$0x3] %vm1790_vm11, %v782_v35  ;;  %v833_v37 = vrot.slane %v826_v36, %v772_v22  ;;  %840 = sbr.rel (%p1165_p9) target bundleno = 487 (0x1e7), region = 60 }
 0x1c0   : > { %v835_v38 = vadd.f32 %v833_v37, %v788_v4 }
 0x1c2   : > { %836 = vst.msk [vmem:[#allocation3] sm:$0x3] %vm1790_vm11, %v835_v38 }
 0x1c3   : > { %v848_v46 = vld [vmem:[%s453_s20] sm:$0x3] }
 0x1c4   : > { %v853_v49 = vld [vmem:[%s458_s22] sm:$0x3] }
 0x1c5   : > { %v841_v39 = vld [vmem:[#allocation2] sm:$0x3] }
 0x1c6   : > { %v842_v40 = vmul.f32 0.017857144, %v841_v39 }
 0x1c8   : > { %v845_v42 = vmul.f32 %v842_v40, %v842_v40 }
 0x1c9   : > { %v843_v3 = vld [vmem:[#allocation3] sm:$0x3] }
 0x1ca   : > { %v844_v41 = vmul.f32 0.017857144, %v843_v3 }
 0x1cc   : > { %v846_v43 = vsub.f32 %v844_v41, %v845_v42 }
 0x1ce   : > { %v847_v44 = vmax.f32 %v846_v43, 0.0 }
 0x1d0   : > { %v849_v45 = vadd.f32 1e-05, %v847_v44 }
 0x1d2   : > { %1331 = vrsqrt.f32 %v849_v45 }
 0x1df   : > { %v1332_v47 = vpop.eup %1331 }
 0x1e0   : > { %v851_v48 = vmul.f32 %v1332_v47, %v848_v46 }
 0x1e2   : > { %852 = vst.msk [vmem:[%s1776_s30] sm:$0x3] %vm1790_vm11, %v851_v48  ;;  %v854_v50 = vmul.f32 %v851_v48, %v842_v40 }
 0x1e4   : > { %v855_v51 = vsub.f32 %v853_v49, %v854_v50 }
 0x1e6   : > { %856 = vst.msk [vmem:[%s1780_s19] sm:$0x3] %vm1790_vm11, %v855_v51 }
 0x1e7 PF: > { %s862_s28 = scalar_lea.sflag [#allocation6], %s1697_s29  ;;  %s867_s20 = scalar_lea.sflag [#allocation10], %s1697_s29  ;;  %v913_v52 = vld [vmem:[%s1768_s26] sm:$0xff] (%p1654_p12)  ;;  %v915_v53 = vld [vmem:[%s1768_s26 + $0x8] sm:$0xff] (%p1654_p12)  ;;  %v917_v54 = vld [vmem:[%s1768_s26 + $0x10] sm:$0xff] (%p1654_p12) }
 0x1e8   : > { %873 = sbr.rel (!%p1654_p12) target bundleno = 494 (0x1ee), region = 64  ;;  %s1170_s9 = sshll.u32 (%p1654_p12), %s1487_s14, 4  ;;  %v919_v55 = vld [vmem:[%s1768_s26 + $0x18] sm:$0xff] (%p1654_p12) }
 0x1e9   : > { %s876_s22 = sadd.s32 (%p1654_p12), %s1170_s9, %s1739_s17 }
 0x1ea   : > { %s1171_s13 = sshll.u32 (%p1654_p12), %s876_s22, 2 }
 0x1eb   : > { %s878_s10 = scalar_lea.vmem (%p1654_p12), %s1910_s7, %s1171_s13 }
 0x1ec   : > { %914 = vst [vmem:[%s878_s10] sm:$0xff] (%p1654_p12), %v913_v52  ;;  %916 = vst [vmem:[%s878_s10 + $0x10] sm:$0xff] (%p1654_p12), %v915_v53 }
 0x1ed   : > { %918 = vst [vmem:[%s878_s10 + $0x20] sm:$0xff] %v917_v54  ;;  %920 = vst [vmem:[%s878_s10 + $0x30] sm:$0xff] %v919_v55 }
 0x1ee PF: > { %s1184_s14 = sshll.u32 %s1491_s15, 5  ;;  %s934_s21 = sshll.u32 %s1776_s30, 4  ;;  %s935_s21 = int_to_ptr.vmem [resolvable:$true] %s934_s21 }
 0x1ef   : > { %s1941_s26 = sld [smem:[#allocation23_spill]]  ;;  %s1361_s25 = scalar_lea.vmem %s935_s21, 32 }
 0x1f0   : > { %p1362_p12 = scmp.ne.s32.totalorder %s935_s21, %s1361_s25  ;;  %s1516_s9 = smov [#allocation8]  }
 0x1f1   : > { %s1365_s22 = sshll.u32 %s1516_s9, 4  ;;  %s1366_s22 = int_to_ptr.vmem [resolvable:$false] %s1365_s22 }
 0x1f2   : > { %p1363_p3 = pnand %p1362_p12, %p1667_p13  ;;  %s1367_s13 = scalar_lea.vmem %s1366_s22, 64 }
 0x1f3   : > { %p1368_p11 = scmp.lt.s32.totalorder %s935_s21, %s1366_s22  ;;  %p1369_p0 = scmp.lt.s32.totalorder %s1367_s13, %s1361_s25 }
 0x1f4   : > { %p1364_p10 = pneg %p1363_p3 }
 0x1f5   : > { %s932_s27 = scalar_lea.hbm %s1941_s26, %s1184_s14  ;;  %p1370_p2 = por %p1369_p0, %p1368_p11 }
 0x1f7   : > { %p1371_p1 = pnand %p1370_p2, %p1364_p10 }
 0x1f9   : > { %1374 = shalt.err (!%p1371_p1)
}
 0x1fa   : > { %s1375_s30 = scalar_lea.hbm %s932_s27, 32  ;;  %s1379_s10 = scalar_lea.hbm %s1941_s26, 64 }
 0x1fb   : > { %p1376_p4 = scmp.ne.s32.totalorder %s932_s27, %s1375_s30  ;;  %p1380_p8 = scmp.lt.s32.totalorder %s932_s27, %s1941_s26 }
 0x1fc   : > { %p1381_p9 = scmp.lt.s32.totalorder %s1379_s10, %s1375_s30 }
 0x1fd   : > { %p1377_p6 = pnand %p1376_p4, %p1667_p13 }
 0x1fe   : > { %p1382_p12 = por %p1381_p9, %p1380_p8 }
 0x1ff   : > { %p1378_p7 = pneg %p1377_p6 }
 0x201   : > { %p1383_p3 = pnand %p1382_p12, %p1378_p7 }
 0x203   : > { %1386 = shalt.err (!%p1383_p3)
}
 0x204   : > { %1209 = dma.vmem_to_hbm [thread:$0]  (%p1667_p13), %s935_s21, 32, %s932_s27, %s862_s28  }
 0x205   : > { %s1942_s22 = sld [smem:[#allocation24_spill]]  ;;  %s948_s16 = sshll.u32 %s1780_s19, 4  ;;  %s949_s16 = int_to_ptr.vmem [resolvable:$true] %s948_s16 }
 0x206   : > { %s1387_s23 = scalar_lea.vmem %s949_s16, 32  ;;  %s1517_s30 = smov [#allocation9]  }
 0x207   : > { %p1388_p10 = scmp.ne.s32.totalorder %s949_s16, %s1387_s23  ;;  %s1391_s10 = sshll.u32 %s1517_s30, 4  ;;  %s1392_s10 = int_to_ptr.vmem [resolvable:$false] %s1391_s10 }
 0x208   : > { %s1393_s17 = scalar_lea.vmem %s1392_s10, 64  ;;  %p1394_p2 = scmp.lt.s32.totalorder %s949_s16, %s1392_s10 }
 0x209   : > { %p1389_p11 = pnand %p1388_p10, %p1667_p13  ;;  %p1395_p1 = scmp.lt.s32.totalorder %s1393_s17, %s1387_s23 }
 0x20b   : > { %s946_s13 = scalar_lea.hbm %s1942_s22, %s1184_s14  ;;  %p1390_p0 = pneg %p1389_p11 }
 0x20c   : > { %p1396_p4 = por %p1395_p1, %p1394_p2 }
 0x20e   : > { %p1397_p6 = pnand %p1396_p4, %p1390_p0 }
 0x210   : > { %1400 = shalt.err (!%p1397_p6)
}
 0x211   : > { %s1401_s15 = scalar_lea.hbm %s946_s13, 32  ;;  %s1405_s14 = scalar_lea.hbm %s1942_s22, 64 }
 0x212   : > { %p1402_p7 = scmp.ne.s32.totalorder %s946_s13, %s1401_s15  ;;  %p1406_p12 = scmp.lt.s32.totalorder %s946_s13, %s1942_s22 }
 0x213   : > { %p1407_p3 = scmp.lt.s32.totalorder %s1405_s14, %s1401_s15 }
 0x214   : > { %p1403_p8 = pnand %p1402_p7, %p1667_p13 }
 0x215   : > { %p1408_p10 = por %p1407_p3, %p1406_p12 }
 0x216   : > { %p1404_p9 = pneg %p1403_p8 }
 0x218   : > { %p1409_p11 = pnand %p1408_p10, %p1404_p9 }
 0x21a   : > { %1412 = shalt.err (!%p1409_p11)
}
 0x21b   : > { %1210 = dma.vmem_to_hbm [thread:$0]  (%p1667_p13), %s949_s16, 32, %s946_s13, %s867_s20  }
 0x21c PF: > { %p1225_p0 = scmp.ge.s32.totalorder %s1503_s18, 2  ;;  %s967_s25 = sand.u32 1, %s1475_s11  }
 0x21d   : > { %s968_s9 = scalar_lea.sflag [#allocation6], %s967_s25 }
 0x21e   : > { %p1218_p2 = pnand %p1225_p0, %p1675_p5 }
 0x220   : > { %p1219_p1 = pneg %p1218_p2 }
 0x222   : > { %1458 = dma.done.wait (%p1219_p1), %s968_s9, 32  }
 0x223   : > { %1460 = vsyncadd (%p1219_p1), %s968_s9, 4294967264  ;;  %s977_s23 = scalar_lea.sflag [#allocation10], %s967_s25 }
 0x224   : > { %1462 = dma.done.wait (%p1219_p1), %s977_s23, 32  }
 0x225   : > { %1464 = vsyncadd (%p1219_p1), %s977_s23, 4294967264  ;;  %s29_s18 = sadd.s32 1, %s1503_s18   ;;  %s1944_s30 = sld [smem:[#allocation14_spill]] }
 0x226   : > { %p26_p4 = scmp.ge.s32.totalorder %s29_s18, 6   ;;  %s1945_s10 = sld [smem:[#allocation21_spill]] }
 0x227   : > { %s1946_s8 = sld [smem:[#allocation15_spill]]  ;;  %s1952_s11 = smov %s1479_s12 }
 0x228   : > { %s1947_s13 = sld [smem:[#allocation20_spill]] }
 0x229   : > { %s1948_s14 = sld [smem:[#allocation16_spill]]  ;;  %28 = sbr.rel (!%p26_p4) target bundleno = 13 (0xd), region = 180 }
 0x22a   : > { %s1949_s15 = sld [smem:[#allocation17_spill]] }
 0x22b   : > { %s1950_s16 = sld [smem:[#allocation18_spill]] }
 0x22c   : > { %s1951_s17 = sld [smem:[#allocation19_spill]] }
 0x22d   : > { %s1953_s12 = smov %s1946_s8 }
 0x22e   :  { %982 = vsyncpa [#allocation5], 1 }
 0x22f   :  { %984 = vsyncpa [#allocation5 + $0x1], 1 }
 0x230   :  { %985 = vsyncpa [#allocation6], 1 }
 0x231   :  { %987 = vsyncpa [#allocation6 + $0x1], 1 }
 0x232   :  { %988 = vsyncpa [#allocation10], 1 }
 0x233   :  { %990 = vsyncpa [#allocation10 + $0x1], 1 }

</bundles_post_ra>
